<compile_context>
chip_gen: v7x
topology: tpu7x:2x2x1
jax: 0.10.0
libtpu: 0.0.40
codegen_flags: <defaults>
</compile_context>

<pallas_src>
import math
import functools

import jax
import jax.numpy as jnp
from jax.experimental import pallas as pl
from jax.experimental.pallas import tpu as pltpu


# ------------------------------ tiling helper ------------------------------ #

def _pick_tile(dim, target, align):
    """Largest tile <= target that divides dim and respects the (8,128) rule.
    Falls back to the full dimension (always legal for a BlockSpec)."""
    if dim <= target:
        return dim
    t = (target // align) * align
    while t >= align:
        if dim % t == 0:
            return t
        t -= align
    return dim


# ------------------------- tiled linear (+bias/relu/residual) -------------- #

def _linear_kernel(*refs, relu, has_residual):
    if has_residual:
        x_ref, w_ref, b_ref, r_ref, o_ref, acc_ref = refs
    else:
        x_ref, w_ref, b_ref, o_ref, acc_ref = refs
        r_ref = None
    k = pl.program_id(2)

    @pl.when(k == 0)
    def _():
        acc_ref[...] = jnp.zeros_like(acc_ref)

    acc_ref[...] += jnp.dot(x_ref[...], w_ref[...],
                            preferred_element_type=jnp.float32)

    @pl.when(k == pl.num_programs(2) - 1)
    def _():
        out = acc_ref[...] + b_ref[...].astype(jnp.float32)
        if relu:
            out = jnp.maximum(out, 0.0)
        if has_residual:
            out = out + r_ref[...].astype(jnp.float32)
        o_ref[...] = out.astype(o_ref.dtype)


def pallas_linear(x, w_t, b, residual=None, relu=False,
                  tm=256, tn=512, tk=512):
    """y = [relu](x @ W_t + b) [+ residual].

    x: (N, Din), w_t: (Din, Dout), b: (1, Dout), residual: (N, Dout) or None.
    Tiled over (N/tm, Dout/tn, Din/tk) with an f32 VMEM accumulator.
    """
    N, Din = x.shape
    Dout = w_t.shape[1]
    tm = _pick_tile(N, tm, 8)
    tk = _pick_tile(Din, tk, 128)
    tn = _pick_tile(Dout, tn, 128)
    grid = (N // tm, Dout // tn, Din // tk)

    has_residual = residual is not None
    kernel = functools.partial(_linear_kernel, relu=relu,
                               has_residual=has_residual)

    in_specs = [
        pl.BlockSpec((tm, tk), lambda i, j, k: (i, k)),
        pl.BlockSpec((tk, tn), lambda i, j, k: (k, j)),
        pl.BlockSpec((1, tn), lambda i, j, k: (0, j)),   # bias: constant over k
    ]
    args = [x, w_t, b]
    if has_residual:
        in_specs.append(pl.BlockSpec((tm, tn), lambda i, j, k: (i, j)))
        args.append(residual)

    return pl.pallas_call(
        kernel,
        out_shape=jax.ShapeDtypeStruct((N, Dout), x.dtype),
        grid=grid,
        in_specs=in_specs,
        out_specs=pl.BlockSpec((tm, tn), lambda i, j, k: (i, j)),
        scratch_shapes=[pltpu.VMEM((tm, tn), jnp.float32)],
        compiler_params=pltpu.CompilerParams(
            dimension_semantics=("parallel", "parallel", "arbitrary")),
    )(*args)


# --------------------------------- LayerNorm -------------------------------- #

def _layernorm_kernel(x_ref, a_ref, b_ref, o_ref, *, eps):
    x = x_ref[...].astype(jnp.float32)
    d = x.shape[-1]
    mean = jnp.mean(x, axis=-1, keepdims=True)
    xc = x - mean
    # torch.std default is the unbiased estimator (ddof = 1)
    std = jnp.sqrt(jnp.sum(xc * xc, axis=-1, keepdims=True) / (d - 1))
    norm = a_ref[...] * xc * pl.reciprocal(std + eps) + b_ref[...]
    o_ref[...] = norm.astype(o_ref.dtype)


def pallas_layernorm(x2d, alpha, bias, eps=1e-7, tr=256):
    """Row-wise LayerNorm matching the PyTorch module exactly."""
    N, D = x2d.shape
    tr = _pick_tile(N, tr, 8)
    kernel = functools.partial(_layernorm_kernel, eps=eps)
    return pl.pallas_call(
        kernel,
        out_shape=jax.ShapeDtypeStruct((N, D), x2d.dtype),
        grid=(N // tr,),
        in_specs=[
            pl.BlockSpec((tr, D), lambda i: (i, 0)),
            pl.BlockSpec((1, D), lambda i: (0, 0)),
            pl.BlockSpec((1, D), lambda i: (0, 0)),
        ],
        out_specs=pl.BlockSpec((tr, D), lambda i: (i, 0)),
        compiler_params=pltpu.CompilerParams(
            dimension_semantics=("parallel",)),
    )(x2d, alpha, bias)


# --------------------------------- Attention -------------------------------- #

def _attn_kernel(q_ref, k_ref, v_ref, o_ref, *, dh):
    # One batch per grid step: refs are (H, S, dh).
    # TODO(synk): mask path (masked_fill -1e9) not wired; mask=None only.
    # TODO(synk): for long S, flash-tile the KV axis (m/l/acc scratch) so the
    #             (S,S) score block never has to fit in VMEM (v7x: 64 MiB).
    scale = 1.0 / math.sqrt(dh)
    q = q_ref[...].astype(jnp.float32) * scale        # scale folded into q
    k = k_ref[...].astype(jnp.float32)
    v = v_ref[...]
    # Batched over heads, contract on dh -> no explicit k.T / XLU transpose.
    s = jax.lax.dot_general(q, k, (((2,), (2,)), ((0,), (0,))),
                            preferred_element_type=jnp.float32)   # (H, S, S)
    m = jnp.max(s, axis=-1, keepdims=True)
    p = jnp.exp(s - m)
    l = jnp.sum(p, axis=-1, keepdims=True)
    pv = jax.lax.dot_general(p.astype(v.dtype), v, (((2,), (1,)), ((0,), (0,))),
                             preferred_element_type=jnp.float32)  # (H, S, dh)
    # Normalize after the PV matmul: touches S*dh elements, not S*S.
    o_ref[...] = (pv * pl.reciprocal(l)).astype(o_ref.dtype)


def pallas_attention(qh, kh, vh):
    """qh/kh/vh: (B, H, S, dh) -> (B, H, S, dh); one grid step per batch."""
    B, H, S, dh = qh.shape
    kernel = functools.partial(_attn_kernel, dh=dh)
    spec = pl.BlockSpec((None, H, S, dh), lambda b: (b, 0, 0, 0))
    return pl.pallas_call(
        kernel,
        out_shape=jax.ShapeDtypeStruct((B, H, S, dh), qh.dtype),
        grid=(B,),
        in_specs=[spec, spec, spec],
        out_specs=spec,
        compiler_params=pltpu.CompilerParams(
            dimension_semantics=("parallel",)),
    )(qh, kh, vh)


# ------------------------------ Module wrapper ------------------------------ #

class EncoderLayerPallas:
    """Pallas re-implementation of EncoderLayer.forward (eval mode)."""

    def __init__(self, d_model, n_heads, ff_dim, key):
        self.d_model = d_model
        self.n_heads = n_heads
        self.dh = d_model // n_heads
        ks = jax.random.split(key, 12)

        def lin_init(kw, kb, din, dout):   # PyTorch nn.Linear default init
            bound = 1.0 / math.sqrt(din)
            w_t = jax.random.uniform(kw, (din, dout), jnp.float32, -bound, bound)
            bb = jax.random.uniform(kb, (1, dout), jnp.float32, -bound, bound)
            return w_t, bb

        self.wq_t, self.bq = lin_init(ks[0], ks[1], d_model, d_model)
        self.wk_t, self.bk = lin_init(ks[2], ks[3], d_model, d_model)
        self.wv_t, self.bv = lin_init(ks[4], ks[5], d_model, d_model)
        # Fused QKV weight: one projection pallas_call reads x1 once.
        self.wqkv_t = jnp.concatenate([self.wq_t, self.wk_t, self.wv_t], axis=1)
        self.bqkv = jnp.concatenate([self.bq, self.bk, self.bv], axis=1)

        self.w1_t, self.b1 = lin_init(ks[6], ks[7], d_model, d_model)     # attn out proj
        self.wf1_t, self.bf1 = lin_init(ks[8], ks[9], d_model, ff_dim)    # FF fc1
        self.wf2_t, self.bf2 = lin_init(ks[10], ks[11], ff_dim, d_model)  # FF fc2

        # LayerNorm params (PyTorch init: ones / zeros)
        self.ln1_a = jnp.ones((1, d_model), jnp.float32)
        self.ln1_b = jnp.zeros((1, d_model), jnp.float32)
        self.ln2_a = jnp.ones((1, d_model), jnp.float32)
        self.ln2_b = jnp.zeros((1, d_model), jnp.float32)

    def __call__(self, x, mask=None):
        # TODO(synk): mask path (masked_fill -1e9) not implemented; mask=None only.
        # TODO(synk): nn.Dropout is identity in eval mode; training dropout omitted.
        assert mask is None
        B, S, D = x.shape
        H, dh = self.n_heads, self.dh
        N = B * S
        x2 = x.reshape(N, D)

        # ---- attention sub-block: x + fc1(attn(norm1(x))) ----
        x1 = pallas_layernorm(x2, self.ln1_a, self.ln1_b)
        qkv = pallas_linear(x1, self.wqkv_t, self.bqkv)              # fused QKV
        q, k, v = qkv[:, :D], qkv[:, D:2 * D], qkv[:, 2 * D:]
        # Exact PyTorch .view(B, n_heads, -1, dh): raw row-major reshape glue.
        qh = q.reshape(B, H, -1, dh)
        kh = k.reshape(B, H, -1, dh)
        vh = v.reshape(B, H, -1, dh)
        attn = pallas_attention(qh, kh, vh)                          # (B, H, S, dh)
        scores = attn.reshape(N, D)                                  # raw reshape back
        # output projection with the residual add fused into the epilogue
        x_res = pallas_linear(scores, self.w1_t, self.b1, residual=x2)

        # ---- feed-forward sub-block: x + fc2(relu(ff1(norm2(x)))) ----
        x1 = pallas_layernorm(x_res, self.ln2_a, self.ln2_b)
        h = pallas_linear(x1, self.wf1_t, self.bf1, relu=True)       # fc1 + ReLU fused
        out = pallas_linear(h, self.wf2_t, self.bf2, residual=x_res) # fc2 + residual
        return out.reshape(B, S, D)


# ------------------------------ Pure-JAX reference -------------------------- #

def reference_forward(m, x, eps=1e-7):
    B, S, D = x.shape
    H, dh = m.n_heads, m.dh

    def ln(t, a, b):
        mean = t.mean(-1, keepdims=True)
        std = jnp.sqrt(((t - mean) ** 2).sum(-1, keepdims=True) / (t.shape[-1] - 1))
        return a * (t - mean) / (std + eps) + b

    def lin(t, wt, b):
        return t @ wt + b

    x1 = ln(x, m.ln1_a, m.ln1_b)
    q = lin(x1, m.wq_t, m.bq).reshape(B, H, -1, dh)
    k = lin(x1, m.wk_t, m.bk).reshape(B, H, -1, dh)
    v = lin(x1, m.wv_t, m.bv).reshape(B, H, -1, dh)
    s = jnp.einsum("bhqd,bhkd->bhqk", q, k) / math.sqrt(dh)
    p = jax.nn.softmax(s, axis=-1)
    att = jnp.einsum("bhqk,bhkd->bhqd", p, v).reshape(B, -1, D)
    x = x + lin(att, m.w1_t, m.b1)

    x1 = ln(x, m.ln2_a, m.ln2_b)
    h = jax.nn.relu(lin(x1, m.wf1_t, m.bf1))
    return x + lin(h, m.wf2_t, m.bf2)


# ----------------------------------- main ----------------------------------- #

if __name__ == "__main__":
    B, S, d_model, n_heads, ff_dim = 2, 8, 32, 4, 64

    key = jax.random.PRNGKey(0)
    kx, kparam = jax.random.split(key)
    x = jax.random.normal(kx, (B, S, d_model), jnp.float32)

    layer = EncoderLayerPallas(d_model, n_heads, ff_dim, kparam)

    out = jax.block_until_ready(layer(x, mask=None))

    ref = reference_forward(layer, x)
    assert out.shape == (B, S, d_model), out.shape
    max_err = float(jnp.max(jnp.abs(out - ref)))
    assert jnp.allclose(out, ref, rtol=2e-4, atol=2e-4), max_err

    print("KERNEL_OK")
</pallas_src>

<mosaic_0001>
module attributes {stable_mosaic.version = 11 : i64} {
  func.func @_layernorm_kernel(%arg0: i32, %arg1: memref<16x32xf32, #tpu.memory_space<vmem>>, %arg2: memref<1x32xf32, #tpu.memory_space<vmem>>, %arg3: memref<1x32xf32, #tpu.memory_space<vmem>>, %arg4: memref<16x32xf32, #tpu.memory_space<vmem>>) attributes {dimension_semantics = [#tpu.dimension_semantics<parallel>], iteration_bounds = array<i64: 1>, scalar_prefetch = 0 : i64, scratch_operands = 0 : i64, tpu.core_type = #tpu.core_type<tc>, window_params = [{transform_indices = @transform_0, window_bounds = array<i64: 16, 32>}, {pipeline_mode = #tpu.pipeline_mode<synchronous>, transform_indices = @transform_1, window_bounds = array<i64: 1, 32>}, {pipeline_mode = #tpu.pipeline_mode<synchronous>, transform_indices = @transform_2, window_bounds = array<i64: 1, 32>}, {transform_indices = @transform_3, window_bounds = array<i64: 16, 32>}]} {
    %c0 = arith.constant 0 : index
    %c0_0 = arith.constant 0 : index
    %0 = vector.load %arg1[%c0, %c0_0] : memref<16x32xf32, #tpu.memory_space<vmem>>, vector<16x32xf32>
    %cst = arith.constant dense<0.000000e+00> : vector<16xf32>
    %1 = vector.multi_reduction <add>, %0, %cst [1] : vector<16x32xf32> to vector<16xf32>
    %2 = vector.shape_cast %1 : vector<16xf32> to vector<16x1xf32>
    %cst_1 = arith.constant 3.200000e+01 : f32
    %3 = vector.broadcast %cst_1 : f32 to vector<16x1xf32>
    %4 = arith.divf %2, %3 : vector<16x1xf32>
    %5 = vector.broadcast %4 : vector<16x1xf32> to vector<16x32xf32>
    %6 = arith.subf %0, %5 : vector<16x32xf32>
    %7 = arith.mulf %6, %6 : vector<16x32xf32>
    %cst_2 = arith.constant dense<0.000000e+00> : vector<16xf32>
    %8 = vector.multi_reduction <add>, %7, %cst_2 [1] : vector<16x32xf32> to vector<16xf32>
    %9 = vector.shape_cast %8 : vector<16xf32> to vector<16x1xf32>
    %cst_3 = arith.constant 3.100000e+01 : f32
    %10 = vector.broadcast %cst_3 : f32 to vector<16x1xf32>
    %11 = arith.divf %9, %10 : vector<16x1xf32>
    %12 = math.sqrt %11 : vector<16x1xf32>
    %c0_4 = arith.constant 0 : index
    %c0_5 = arith.constant 0 : index
    %13 = vector.load %arg2[%c0_4, %c0_5] : memref<1x32xf32, #tpu.memory_space<vmem>>, vector<1x32xf32>
    %14 = vector.broadcast %13 : vector<1x32xf32> to vector<16x32xf32>
    %15 = arith.mulf %14, %6 : vector<16x32xf32>
    %cst_6 = arith.constant 1.000000e-07 : f32
    %16 = vector.broadcast %cst_6 : f32 to vector<16x1xf32>
    %17 = arith.addf %12, %16 : vector<16x1xf32>
    %18 = tpu.reciprocal %17 : vector<16x1xf32> -> vector<16x1xf32>
    %19 = vector.broadcast %18 : vector<16x1xf32> to vector<16x32xf32>
    %20 = arith.mulf %15, %19 : vector<16x32xf32>
    %c0_7 = arith.constant 0 : index
    %c0_8 = arith.constant 0 : index
    %21 = vector.load %arg3[%c0_7, %c0_8] : memref<1x32xf32, #tpu.memory_space<vmem>>, vector<1x32xf32>
    %22 = vector.broadcast %21 : vector<1x32xf32> to vector<16x32xf32>
    %23 = arith.addf %20, %22 : vector<16x32xf32>
    %c0_9 = arith.constant 0 : index
    %c0_10 = arith.constant 0 : index
    %24 = vector.load %arg4[%c0_9, %c0_10] : memref<16x32xf32, #tpu.memory_space<vmem>>, vector<16x32xf32>
    tpu.vector_store %arg4[%c0_9, %c0_10], %23 {strides = array<i32>} : memref<16x32xf32, #tpu.memory_space<vmem>>, vector<16x32xf32>,
    return
  }
  func.func @transform_0(%arg0: i32) -> (i32, i32) {
    %c0_i32 = arith.constant 0 : i32
    %c0_i32_0 = arith.constant 0 : i32
    return %arg0, %c0_i32 : i32, i32
  }
  func.func @transform_1(%arg0: i32) -> (i32, i32) {
    %c0_i32 = arith.constant 0 : i32
    %c0_i32_0 = arith.constant 0 : i32
    %c0_i32_1 = arith.constant 0 : i32
    return %c0_i32, %c0_i32_0 : i32, i32
  }
  func.func @transform_2(%arg0: i32) -> (i32, i32) {
    %c0_i32 = arith.constant 0 : i32
    %c0_i32_0 = arith.constant 0 : i32
    %c0_i32_1 = arith.constant 0 : i32
    return %c0_i32, %c0_i32_0 : i32, i32
  }
  func.func @transform_3(%arg0: i32) -> (i32, i32) {
    %c0_i32 = arith.constant 0 : i32
    %c0_i32_0 = arith.constant 0 : i32
    return %arg0, %c0_i32 : i32, i32
  }
}

</mosaic_0001>

<bundles_post_ra>
// kernel: tpu_custom_call.1
= control target key start
LH: loop header
LB: loop body
LE: loop exit
PB: predicated region body
PF: predicated region fallthrough
CT: control target
= control target key end

     0   :  { %8 = vsyncpa [#allocation3], 0  ;;  %s239_s0 = inlined_call_operand.hbm [shape: f32[16,32], index: 0, kind: input, shape index: {}]   ;;  %s240_s1 = inlined_call_operand.vmem [shape: f32[1,32], index: 1, kind: input, shape index: {}]   ;;  %s241_s2 = inlined_call_operand.vmem [shape: f32[1,32], index: 2, kind: input, shape index: {}]   ;;  %s242_s3 = inlined_call_operand.hbm [shape: f32[16,32], index: 3, kind: output, shape index: {}]  }
   0x1   :  { %9 = vsyncpa [#allocation4], 0  ;;  %s173_s12 = smov [#allocation2]   ;;  %s125_s16 = scalar_lea.hbm %s239_s0, 256 }
   0x2   :  { %s15_s13 = sshll.u32 %s173_s12, 4  ;;  %p126_p0 = scmp.ne.s32.totalorder %s239_s0, %s125_s16  ;;  %s16_s13 = int_to_ptr.vmem [resolvable:$true] %s15_s13 }
   0x3   :  { %p129_p1 = scmp.lt.u32.totalorder %s125_s16, %s239_s0 }
   0x5   :  { %p131_p2 = pnand %p129_p1, %p126_p0 }
   0x7   :  { %134 = shalt.err (!%p131_p2)
}
   0x8   :  { %s135_s21 = scalar_lea.vmem %s16_s13, 256  ;;  %p140_p4 = scmp.lt.s32.totalorder %s16_s13, %s16_s13 }
   0x9   :  { %p136_p3 = scmp.ne.s32.totalorder %s16_s13, %s135_s21  ;;  %p141_p5 = scmp.lt.s32.totalorder %s135_s21, %s135_s21 }
   0xb   :  { %p142_p6 = por %p141_p5, %p140_p4 }
   0xd   :  { %p143_p7 = pnand %p142_p6, %p136_p3 }
   0xf   :  { %146 = shalt.err (!%p143_p7)
}
  0x10   :  { %s174_s22 = smov 128   ;;  %s175_s23 = smov 8  }
  0x11   :  { %21 = dma.hbm_to_vmem [thread:$0]  %s239_s0, 256, %s16_s13, [#allocation3], %s174_s22, %s174_s22, %s175_s23  }
  0x12   :  { %169 = dma.done.wait [#allocation3], 256  }
  0x13   :  { %170 = vsyncadd [#allocation3], 4294967040  ;;  %vm31_vm0 = vcmask 261120   ;;  %v29_v0 = vld [vmem:[#allocation2] sm:$0xff]  ;;  %v30_v1 = vld [vmem:[#allocation2 + $0x8] sm:$0xff]  ;;  %s176_s29 = smov [#allocation5]  }
  0x14   :  { %v32_v2 = vsel %vm31_vm0, %v29_v0, 0.0  ;;  %v35_v3 = vsel %vm31_vm0, %v30_v1, 0.0  ;;  %v111_v30 = vld [vmem:[%s240_s1] ss:$0 sm:$0xff]  ;;  %s99_s30 = sshll.u32 %s176_s29, 4  ;;  %s100_s30 = int_to_ptr.vmem [resolvable:$true] %s99_s30 }
  0x15   :  { %33 = vadd.xlane.f32.xlu0 %v32_v2  ;;  %v112_v33 = vld [vmem:[%s241_s2] ss:$0 sm:$0xff]  ;;  %s147_s1 = scalar_lea.vmem %s100_s30, 256  ;;  %p152_p9 = scmp.lt.s32.totalorder %s100_s30, %s100_s30 }
  0x16   :  { %p148_p8 = scmp.ne.s32.totalorder %s100_s30, %s147_s1  ;;  %p153_p10 = scmp.lt.s32.totalorder %s147_s1, %s147_s1 }
  0x18   :  { %p154_p11 = por %p153_p10, %p152_p9 }
  0x19   :  { %36 = vadd.xlane.f32.xlu0 %v35_v3 }
  0x1a   :  { %p155_p12 = pnand %p154_p11, %p148_p8 }
  0xa2   :  { %v34_v4 = vpop.xlane.xlu0 %33 }
  0xa3   :  { %v39_v5 = vmul.f32 0.03125, %v34_v4 }
  0xa5   :  { %v41_v6 = vsub.f32 %v29_v0, %v39_v5 }
  0xa6   :  { %v37_v7 = vpop.xlane.xlu0 %36 }
  0xa7   :  { %v40_v8 = vmul.f32 0.03125, %v37_v7  ;;  %v43_v9 = vmul.f32 %v41_v6, %v41_v6  ;;  %v75_v31 = vmul.f32 %v111_v30, %v41_v6 }
  0xa9   :  { %v42_v10 = vsub.f32 %v30_v1, %v40_v8  ;;  %v45_v11 = vsel %vm31_vm0, %v43_v9, 0.0 }
  0xaa   :  { %46 = vadd.xlane.f32.xlu1 %v45_v11 }
  0xab   :  { %v44_v12 = vmul.f32 %v42_v10, %v42_v10  ;;  %v76_v35 = vmul.f32 %v111_v30, %v42_v10 }
  0xad   :  { %v48_v13 = vsel %vm31_vm0, %v44_v12, 0.0 }
  0xae   :  { %49 = vadd.xlane.f32.xlu1 %v48_v13 }
 0x137   :  { %v47_v14 = vpop.xlane.xlu1 %46 }
 0x138   :  { %v52_v15 = vmul.f32 0.032258064, %v47_v14 }
 0x13a   :  { %117 = vrsqrt.f32 %v52_v15  ;;  %vm56_vm1 = vcmp.eq.f32.partialorder %v52_v15, inf  ;;  %v59_v20 = vand.u32 2147483648, %v52_v15  ;;  %vm58_vm2 = vcmp.eq.f32.partialorder %v52_v15, 0.0 }
 0x13b   :  { %v50_v16 = vpop.xlane.xlu1 %49 }
 0x13c   :  { %v53_v17 = vmul.f32 0.032258064, %v50_v16 }
 0x13e   :  { %119 = vrsqrt.f32 %v53_v17  ;;  %vm63_vm3 = vcmp.eq.f32.partialorder %v53_v17, inf  ;;  %v66_v26 = vand.u32 2147483648, %v53_v17  ;;  %vm65_vm4 = vcmp.eq.f32.partialorder %v53_v17, 0.0 }
 0x144   :  { %v118_v18 = vpop.eup %117 }
 0x145   :  { %v55_v19 = vmul.f32 %v118_v18, %v52_v15 }
 0x147   :  { %v57_v21 = vsel %vm56_vm1, %v52_v15, %v55_v19 }
 0x148   :  { %v120_v22 = vpop.eup %119  ;;  %v60_v23 = vsel %vm58_vm2, %v59_v20, %v57_v21 }
 0x149   :  { %v77_v24 = vadd.f32 1e-07, %v60_v23  ;;  %v62_v25 = vmul.f32 %v120_v22, %v53_v17 }
 0x14b   :  { %v64_v27 = vsel %vm63_vm3, %v53_v17, %v62_v25  ;;  %121 = vrcp.f32 %v77_v24 }
 0x14c   :  { %v67_v28 = vsel %vm65_vm4, %v66_v26, %v64_v27 }
 0x14d   :  { %v78_v29 = vadd.f32 1e-07, %v67_v28 }
 0x14f   :  { %123 = vrcp.f32 %v78_v29 }
 0x155   :  { %v122_v32 = vpop.eup %121 }
 0x156   :  { %v81_v34 = vmul.f32 %v122_v32, %v75_v31 }
 0x158   :  { %v90_v36 = vadd.f32 %v112_v33, %v81_v34 }
 0x159   :  { %v124_v37 = vpop.eup %123 }
 0x15a   :  { %v82_v38 = vmul.f32 %v124_v37, %v76_v35  ;;  %92 = vst.msk [vmem:[#allocation5] sm:$0xff] %vm31_vm0, %v90_v36 }
 0x15c   :  { %v91_v39 = vadd.f32 %v112_v33, %v82_v38 }
 0x15e   :  { %93 = vst.msk [vmem:[#allocation5 + $0x8] sm:$0xff] %vm31_vm0, %v91_v39 }
 0x15f   :  { %158 = shalt.err (!%p155_p12)
}
 0x160   :  { %s159_s5 = scalar_lea.hbm %s242_s3, 256 }
 0x161   :  { %p160_p13 = scmp.ne.s32.totalorder %s242_s3, %s159_s5  ;;  %p163_p0 = scmp.lt.u32.totalorder %s159_s5, %s242_s3 }
 0x163   :  { %p165_p1 = pnand %p163_p0, %p160_p13 }
 0x165   :  { %168 = shalt.err (!%p165_p1)
}
 0x166   :  { %105 = dma.vmem_to_hbm [thread:$0]  %s100_s30, 256, %s242_s3, [#allocation4], %s174_s22, %s174_s22, %s175_s23  }
 0x167   :  { %171 = dma.done.wait [#allocation4], 256  }
 0x168   :  { %172 = vsyncadd [#allocation4], 4294967040 }
 0x169   :  { %109 = vsyncpa [#allocation3], 1 }
 0x16a   :  { %110 = vsyncpa [#allocation4], 1 }

</bundles_post_ra>
